<compile_context>
chip_gen: v6e
topology: v6e:2x2x1
jax: 0.10.0
libtpu: 0.0.40
codegen_flags: <defaults>
</compile_context>

<pallas_src>
import math

import jax
import jax.numpy as jnp
from jax.experimental import pallas as pl
from jax.experimental.pallas import tpu as pltpu


# Large finite negative (instead of -inf) so online-softmax rescaling never hits
# inf - inf = NaN when an entire key tile of a row is masked.  For any row with at
# least one visible key the result equals masked_fill(-inf): exp(mask - row_max)
# underflows to exactly 0.  (Degenerate fully-masked rows become a uniform
# average of V instead of NaN.)
_MASK_VALUE = -0.7 * float(jnp.finfo(jnp.float32).max)


def _round_up(x, m):
    return ((x + m - 1) // m) * m


def _make_flash_kernel(*, scale, mask_kind, pad_guard, kv_len, tk, compute_dtype):
    """mask_kind: 'none' | 'dense' | 'lengths'."""

    def kernel(*refs):
        if mask_kind == "lengths":
            lens_ref, q_ref, k_ref, v_ref, o_ref, q_scr, m_scr, l_scr, acc_scr = refs
        elif mask_kind == "dense":
            q_ref, k_ref, v_ref, mask_ref, o_ref, q_scr, m_scr, l_scr, acc_scr = refs
        else:
            q_ref, k_ref, v_ref, o_ref, q_scr, m_scr, l_scr, acc_scr = refs

        b = pl.program_id(0)
        ki = pl.program_id(2)
        nk = pl.num_programs(2)

        @pl.when(ki == 0)
        def _init():
            # Q's block is resident across the whole ki loop (its index_map
            # ignores ki), so fold 1/sqrt(dk) into Q and cast to the MXU dtype
            # exactly once per (b, qi) tile instead of on every key step.
            q_scr[...] = (q_ref[0].astype(jnp.float32) * scale).astype(compute_dtype)
            m_scr[...] = jnp.full_like(m_scr, _MASK_VALUE)
            l_scr[...] = jnp.zeros_like(l_scr)
            acc_scr[...] = jnp.zeros_like(acc_scr)

        def step():
            q = q_scr[...]                               # (tq, Dk), compute_dtype
            k = k_ref[0].astype(compute_dtype)           # (tk, Dk)
            v = v_ref[0].astype(compute_dtype)           # (tk, Dv)

            # s = Q @ K^T without materializing K^T: contract last dims of both
            # operands, MXU accumulates in f32.
            s = jax.lax.dot_general(
                q, k, (((1,), (1,)), ((), ())),
                preferred_element_type=jnp.float32)      # (tq, tk) f32

            if mask_kind == "dense":
                s = jnp.where(mask_ref[0] != 0, _MASK_VALUE, s)

            # Key-padding / length guard as a cheap (1, tk) additive bias:
            # O(tk) iota + compare, then a single broadcast add into s.
            limit = None
            if mask_kind == "lengths":
                limit = lens_ref[b]
            elif pad_guard:
                limit = kv_len
            if limit is not None:
                key_idx = ki * tk + jax.lax.broadcasted_iota(jnp.int32, (1, tk), 1)
                s = s + jnp.where(key_idx >= limit,
                                  jnp.float32(_MASK_VALUE), jnp.float32(0.0))

            # Online softmax; elementwise math in f32 (VPU/EUP), matmuls on MXU.
            m_prev = m_scr[...]                                          # (tq, 1)
            m_new = jnp.maximum(m_prev, jnp.max(s, axis=-1, keepdims=True))
            alpha = jnp.exp(m_prev - m_new)                              # (tq, 1)
            p = jnp.exp(s - m_new)                                       # (tq, tk)
            l_scr[...] = alpha * l_scr[...] + jnp.sum(p, axis=-1, keepdims=True)
            acc_scr[...] = alpha * acc_scr[...] + jnp.dot(
                p.astype(compute_dtype), v, preferred_element_type=jnp.float32)
            m_scr[...] = m_new

        if mask_kind == "lengths":
            # Skip key tiles that are entirely padding for this batch element.
            @pl.when(ki * tk < lens_ref[b])
            def _():
                step()
        else:
            step()

        @pl.when(ki == nk - 1)
        def _finalize():
            # Deferred normalization: one (approximate, EUP) reciprocal per tile.
            o_ref[0] = (acc_scr[...] *
                        pl.reciprocal(l_scr[...], approx=True)).astype(o_ref.dtype)

    return kernel


def attention(Q, K, V, mask=None, lengths=None, dk=64,
              block_q=512, block_k=512, compute_dtype=None,
              vmem_limit_bytes=48 * 1024 * 1024):
    """Pallas equivalent of Attention.forward(Q, K, V, mask, dk).

    mask:    optional [B, Tq, Tk] (True/nonzero = masked) — general path.
    lengths: optional [B] int — fast path for padding masks (key j masked iff
             j >= lengths[b]); no [B,Tq,Tk] mask tensor is ever materialized.
    compute_dtype: dtype fed to the MXU (e.g. jnp.bfloat16 for f32 inputs).
             Default: input dtype (keeps f32 parity with the torch reference).
    """
    B, Tq, Dk = Q.shape
    Bk, Tk, Dk_k = K.shape
    Bv, Tkv, Dv = V.shape
    assert (Bk, Dk_k) == (B, Dk) and (Bv, Tkv) == (B, Tk)
    assert mask is None or lengths is None, "pass at most one of mask / lengths"

    out_dtype = Q.dtype
    if compute_dtype is None:
        compute_dtype = Q.dtype
    scale = 1.0 / math.sqrt(float(dk))

    if lengths is not None:
        mask_kind = "lengths"
    elif mask is not None:
        mask_kind = "dense"
    else:
        mask_kind = "none"

    # ---- tile sizes & padded extents -------------------------------------
    # tk is the lane dim of the (tq, tk) score/prob tiles (and of the int8
    # mask tile), so keep it a multiple of 128 for unmasked full-width vector
    # ops and good MXU occupancy.  tq is a sublane dim everywhere: >=16 for
    # 16-bit compute dtypes, >=32 when an int8 dense-mask tile is streamed.
    assert block_k % 128 == 0
    sub = max(8, 32 // jnp.dtype(compute_dtype).itemsize)
    if mask_kind == "dense":
        sub = max(sub, 32)
    assert block_q % sub == 0

    if Tq <= block_q:
        tq = _round_up(Tq, sub)
        Tq_p = tq
    else:
        tq = block_q
        Tq_p = _round_up(Tq, tq)
    if Tk <= block_k:
        tk = _round_up(Tk, 128)
        Tk_p = tk
    else:
        tk = block_k
        Tk_p = _round_up(Tk, tk)

    if Tq_p != Tq:
        Q = jnp.pad(Q, ((0, 0), (0, Tq_p - Tq), (0, 0)))
    if Tk_p != Tk:
        # TODO(synk): this HBM round trip over K/V could be avoided by letting
        # the ragged last key block read out-of-bounds and relying on the
        # in-kernel guard, but OOB block contents are undefined (may hold
        # inf/NaN that poison 0*x), so keep the explicit pad for correctness.
        K = jnp.pad(K, ((0, 0), (0, Tk_p - Tk), (0, 0)))
        V = jnp.pad(V, ((0, 0), (0, Tk_p - Tk), (0, 0)))

    grid = (B, Tq_p // tq, Tk_p // tk)
    pad_guard = (mask_kind == "none") and (Tk_p != Tk)

    kernel = _make_flash_kernel(scale=scale, mask_kind=mask_kind,
                                pad_guard=pad_guard, kv_len=Tk, tk=tk,
                                compute_dtype=compute_dtype)

    scratch_shapes = [
        pltpu.VMEM((tq, Dk), compute_dtype),   # scaled/cast Q (written at ki == 0)
        pltpu.VMEM((tq, 1), jnp.float32),      # running max   m
        pltpu.VMEM((tq, 1), jnp.float32),      # running sum   l
        pltpu.VMEM((tq, Dv), jnp.float32),     # unnormalized accumulator
    ]
    # TODO(synk): on v7x, consider pltpu.CORE_PARALLEL on the batch axis (or a
    # core_map mesh) if the plain "parallel" axes don't shard across the 2 TCs.
    compiler_params = pltpu.CompilerParams(
        dimension_semantics=("parallel", "parallel", "arbitrary"),
        vmem_limit_bytes=vmem_limit_bytes,
    )
    out_shape = jax.ShapeDtypeStruct((B, Tq_p, Dv), out_dtype)

    if mask_kind == "lengths":
        lengths = jnp.asarray(lengths, dtype=jnp.int32).reshape(B)

        def qo_map(b, qi, ki, lens):
            return (b, qi, 0)

        def kv_map(b, qi, ki, lens):
            # Clamp the key-block index to the last non-empty block for this
            # batch element: a repeated block index makes Pallas skip the DMA,
            # so fully padded key tiles cost neither HBM traffic nor compute
            # (the kernel also skips their compute via pl.when).
            last = jnp.maximum((lens[b] + tk - 1) // tk - 1, 0)
            return (b, jnp.minimum(ki, last), 0)

        grid_spec = pltpu.PrefetchScalarGridSpec(
            num_scalar_prefetch=1,
            grid=grid,
            in_specs=[
                pl.BlockSpec((1, tq, Dk), qo_map),
                pl.BlockSpec((1, tk, Dk), kv_map),
                pl.BlockSpec((1, tk, Dv), kv_map),
            ],
            out_specs=pl.BlockSpec((1, tq, Dv), qo_map),
            scratch_shapes=scratch_shapes,
        )
        out = pl.pallas_call(
            kernel, out_shape=out_shape, grid_spec=grid_spec,
            compiler_params=compiler_params,
        )(lengths, Q, K, V)
    else:
        inputs = [Q, K, V]
        in_specs = [
            pl.BlockSpec((1, tq, Dk), lambda b, qi, ki: (b, qi, 0)),
            pl.BlockSpec((1, tk, Dk), lambda b, qi, ki: (b, ki, 0)),
            pl.BlockSpec((1, tk, Dv), lambda b, qi, ki: (b, ki, 0)),
        ]
        if mask_kind == "dense":
            assert mask.shape == (B, Tq, Tk)
            mask_i8 = mask.astype(jnp.int8)            # 4x less HBM/VMEM than int32
            if (Tq_p, Tk_p) != (Tq, Tk):
                # Padded key columns must be masked; padded query rows are
                # sliced off after the call, their contents don't matter.
                mask_i8 = jnp.pad(mask_i8, ((0, 0), (0, Tq_p - Tq), (0, Tk_p - Tk)),
                                  constant_values=1)
            inputs.append(mask_i8)
            in_specs.append(pl.BlockSpec((1, tq, tk), lambda b, qi, ki: (b, qi, ki)))

        out = pl.pallas_call(
            kernel, out_shape=out_shape, grid=grid,
            in_specs=in_specs,
            out_specs=pl.BlockSpec((1, tq, Dv), lambda b, qi, ki: (b, qi, 0)),
            scratch_shapes=scratch_shapes,
            compiler_params=compiler_params,
        )(*inputs)

    if Tq_p != Tq:
        out = out[:, :Tq, :]
    return out


def _reference(Q, K, V, mask, dk):
    Qf, Kf, Vf = (x.astype(jnp.float32) for x in (Q, K, V))
    w = jnp.einsum("bqd,bkd->bqk", Qf, Kf)
    if mask is not None:
        w = jnp.where(mask, -jnp.inf, w)
    w = jax.nn.softmax(w / (float(dk) ** 0.5), axis=-1)
    return jnp.einsum("bqk,bkd->bqd", w, Vf)


def _padding_mask(lengths, Tq, Tk):
    key_pos = jnp.arange(Tk)[None, None, :]
    m = key_pos >= lengths[:, None, None]
    return jnp.broadcast_to(m, (lengths.shape[0], Tq, Tk))


if __name__ == "__main__":
    # --- small shapes (single tile per batch) -----------------------------
    B, Tq, Tk, Dk, Dv = 2, 8, 8, 32, 32
    key = jax.random.PRNGKey(0)
    kq, kk, kv = jax.random.split(key, 3)
    Q = jax.random.normal(kq, (B, Tq, Dk), dtype=jnp.float32)
    K = jax.random.normal(kk, (B, Tk, Dk), dtype=jnp.float32)
    V = jax.random.normal(kv, (B, Tk, Dv), dtype=jnp.float32)

    lens = jnp.array([Tk, Tk - 3], dtype=jnp.int32)       # batch 1 masks last 3 keys
    mask = _padding_mask(lens, Tq, Tk)
    ref_m = _reference(Q, K, V, mask, dk=Dk)

    # 1) general dense-mask path
    out = jax.block_until_ready(attention(Q, K, V, mask=mask, dk=Dk))
    assert out.shape == (B, Tq, Dv)
    assert jnp.allclose(out, ref_m, atol=2e-3, rtol=2e-3), "mismatch (dense mask)"

    # 2) lengths (scalar-prefetch) fast path — no [B,Tq,Tk] mask materialized
    out = jax.block_until_ready(attention(Q, K, V, lengths=lens, dk=Dk))
    assert jnp.allclose(out, ref_m, atol=2e-3, rtol=2e-3), "mismatch (lengths)"

    # 3) mask=None path with the PyTorch default dk=64
    out = jax.block_until_ready(attention(Q, K, V, mask=None, dk=64))
    ref = _reference(Q, K, V, None, dk=64)
    assert jnp.allclose(out, ref, atol=2e-3, rtol=2e-3), "mismatch (no mask)"

    # --- larger non-tile-multiple shapes: multi-tile online-softmax loop,
    #     sequence padding, pad guard, and per-batch key-tile skipping -------
    B2, Tq2, Tk2, D2 = 2, 300, 640, 64
    kq2, kk2, kv2 = jax.random.split(jax.random.PRNGKey(1), 3)
    Q2 = jax.random.normal(kq2, (B2, Tq2, D2), dtype=jnp.float32)
    K2 = jax.random.normal(kk2, (B2, Tk2, D2), dtype=jnp.float32)
    V2 = jax.random.normal(kv2, (B2, Tk2, D2), dtype=jnp.float32)
    lens2 = jnp.array([Tk2, Tk2 - 500], dtype=jnp.int32)
    mask2 = _padding_mask(lens2, Tq2, Tk2)
    ref2 = _reference(Q2, K2, V2, mask2, dk=D2)

    # lengths path with smaller tiles -> exercises skipping whole padded key tiles
    out = jax.block_until_ready(attention(Q2, K2, V2, lengths=lens2, dk=D2,
                                          block_q=256, block_k=256))
    assert jnp.allclose(out, ref2, atol=2e-3, rtol=2e-3), "mismatch (tiled, lengths)"

    # dense-mask path at default (512) tiles
    out = jax.block_until_ready(attention(Q2, K2, V2, mask=mask2, dk=D2))
    assert jnp.allclose(out, ref2, atol=2e-3, rtol=2e-3), "mismatch (tiled, dense)"

    # no mask, ragged Tk -> in-kernel pad guard
    out = jax.block_until_ready(attention(Q2, K2, V2, mask=None, dk=D2))
    ref4 = _reference(Q2, K2, V2, None, dk=D2)
    assert jnp.allclose(out, ref4, atol=2e-3, rtol=2e-3), "mismatch (tiled, no mask)"

    # bf16 MXU path for f32 inputs (in-kernel cast) — looser tolerance
    out = jax.block_until_ready(attention(Q2, K2, V2, lengths=lens2, dk=D2,
                                          compute_dtype=jnp.bfloat16))
    assert jnp.allclose(out, ref2, atol=2e-2, rtol=2e-2), "mismatch (bf16 compute)"

    # native bf16 inputs
    out = jax.block_until_ready(attention(Q.astype(jnp.bfloat16),
                                          K.astype(jnp.bfloat16),
                                          V.astype(jnp.bfloat16),
                                          lengths=lens, dk=Dk))
    assert jnp.allclose(out.astype(jnp.float32), ref_m, atol=2e-2, rtol=2e-2), \
        "mismatch (bf16 inputs)"

    print("KERNEL_OK")
</pallas_src>

<mosaic_0001>
module attributes {stable_mosaic.version = 11 : i64} {
  func.func @kernel(%arg0: i32, %arg1: i32, %arg2: i32, %arg3: memref<1x32x32xf32, #tpu.memory_space<vmem>>, %arg4: memref<1x128x32xf32, #tpu.memory_space<vmem>>, %arg5: memref<1x128x32xf32, #tpu.memory_space<vmem>>, %arg6: memref<1x32x128xi8, #tpu.memory_space<vmem>>, %arg7: memref<1x32x32xf32, #tpu.memory_space<vmem>>, %arg8: memref<32x32xf32, #tpu.memory_space<vmem>>, %arg9: memref<32x1xf32, #tpu.memory_space<vmem>>, %arg10: memref<32x1xf32, #tpu.memory_space<vmem>>, %arg11: memref<32x32xf32, #tpu.memory_space<vmem>>) attributes {dimension_semantics = [#tpu.dimension_semantics<parallel>, #tpu.dimension_semantics<parallel>, #tpu.dimension_semantics<arbitrary>], iteration_bounds = array<i64: 2, 1, 1>, scalar_prefetch = 0 : i64, scratch_operands = 4 : i64, tpu.core_type = #tpu.core_type<tc>, window_params = [{transform_indices = @transform_0, window_bounds = array<i64: 1, 32, 32>}, {transform_indices = @transform_1, window_bounds = array<i64: 1, 128, 32>}, {transform_indices = @transform_2, window_bounds = array<i64: 1, 128, 32>}, {transform_indices = @transform_3, window_bounds = array<i64: 1, 32, 128>}, {transform_indices = @transform_4, window_bounds = array<i64: 1, 32, 32>}]} {
    %c0_i32 = arith.constant 0 : i32
    %0 = arith.cmpi eq, %arg2, %c0_i32 : i32
    %1 = arith.extui %0 : i1 to i32
    %c0_i32_0 = arith.constant 0 : i32
    %2 = arith.cmpi ne, %1, %c0_i32_0 : i32
    scf.if %2 {
      %c0_29 = arith.constant 0 : index
      %c0_30 = arith.constant 0 : index
      %c0_31 = arith.constant 0 : index
      %40 = vector.load %arg3[%c0_29, %c0_30, %c0_31] : memref<1x32x32xf32, #tpu.memory_space<vmem>>, vector<1x32x32xf32>
      %41 = vector.shape_cast %40 : vector<1x32x32xf32> to vector<32x32xf32>
      %cst_32 = arith.constant 0.176776692 : f32
      %42 = vector.broadcast %cst_32 : f32 to vector<32x32xf32>
      %43 = arith.mulf %41, %42 : vector<32x32xf32>
      %c0_33 = arith.constant 0 : index
      %c0_34 = arith.constant 0 : index
      %44 = vector.load %arg8[%c0_33, %c0_34] : memref<32x32xf32, #tpu.memory_space<vmem>>, vector<32x32xf32>
      tpu.vector_store %arg8[%c0_33, %c0_34], %43 {strides = array<i32>} : memref<32x32xf32, #tpu.memory_space<vmem>>, vector<32x32xf32>,
      %cst_35 = arith.constant -2.38197633E+38 : f32
      %45 = vector.broadcast %cst_35 : f32 to vector<32x1xf32>
      %c0_36 = arith.constant 0 : index
      %c0_37 = arith.constant 0 : index
      %46 = vector.load %arg9[%c0_36, %c0_37] : memref<32x1xf32, #tpu.memory_space<vmem>>, vector<32x1xf32>
      tpu.vector_store %arg9[%c0_36, %c0_37], %45 {strides = array<i32>} : memref<32x1xf32, #tpu.memory_space<vmem>>, vector<32x1xf32>,
      %cst_38 = arith.constant 0.000000e+00 : f32
      %47 = vector.broadcast %cst_38 : f32 to vector<32x1xf32>
      %c0_39 = arith.constant 0 : index
      %c0_40 = arith.constant 0 : index
      %48 = vector.load %arg10[%c0_39, %c0_40] : memref<32x1xf32, #tpu.memory_space<vmem>>, vector<32x1xf32>
      tpu.vector_store %arg10[%c0_39, %c0_40], %47 {strides = array<i32>} : memref<32x1xf32, #tpu.memory_space<vmem>>, vector<32x1xf32>,
      %cst_41 = arith.constant 0.000000e+00 : f32
      %49 = vector.broadcast %cst_41 : f32 to vector<32x32xf32>
      %c0_42 = arith.constant 0 : index
      %c0_43 = arith.constant 0 : index
      %50 = vector.load %arg11[%c0_42, %c0_43] : memref<32x32xf32, #tpu.memory_space<vmem>>, vector<32x32xf32>
      tpu.vector_store %arg11[%c0_42, %c0_43], %49 {strides = array<i32>} : memref<32x32xf32, #tpu.memory_space<vmem>>, vector<32x32xf32>,
    } else {
    }
    %c0 = arith.constant 0 : index
    %c0_1 = arith.constant 0 : index
    %3 = vector.load %arg8[%c0, %c0_1] : memref<32x32xf32, #tpu.memory_space<vmem>>, vector<32x32xf32>
    %c0_2 = arith.constant 0 : index
    %c0_3 = arith.constant 0 : index
    %c0_4 = arith.constant 0 : index
    %4 = vector.load %arg4[%c0_2, %c0_3, %c0_4] : memref<1x128x32xf32, #tpu.memory_space<vmem>>, vector<1x128x32xf32>
    %5 = vector.shape_cast %4 : vector<1x128x32xf32> to vector<128x32xf32>
    %c0_5 = arith.constant 0 : index
    %c0_6 = arith.constant 0 : index
    %c0_7 = arith.constant 0 : index
    %6 = vector.load %arg5[%c0_5, %c0_6, %c0_7] : memref<1x128x32xf32, #tpu.memory_space<vmem>>, vector<1x128x32xf32>
    %7 = vector.shape_cast %6 : vector<1x128x32xf32> to vector<128x32xf32>
    %cst = arith.constant dense<0.000000e+00> : vector<32x128xf32>
    %8 = tpu.matmul %3, %5, %cst {dimension_numbers = #tpu.dot_dimension_numbers<[1], [1], [0], [0], [0, 0, 1, 0], [], []>} : vector<32x32xf32>, vector<128x32xf32>, vector<32x128xf32> -> vector<32x128xf32>
    %c0_8 = arith.constant 0 : index
    %c0_9 = arith.constant 0 : index
    %c0_10 = arith.constant 0 : index
    %9 = vector.load %arg6[%c0_8, %c0_9, %c0_10] : memref<1x32x128xi8, #tpu.memory_space<vmem>>, vector<1x32x128xi8>
    %10 = vector.shape_cast %9 : vector<1x32x128xi8> to vector<32x128xi8>
    %c0_i8 = arith.constant 0 : i8
    %11 = vector.broadcast %c0_i8 : i8 to vector<32x128xi8>
    %12 = arith.cmpi ne, %10, %11 : vector<32x128xi8>
    %cst_11 = arith.constant -2.38197633E+38 : f32
    %13 = vector.broadcast %cst_11 : f32 to vector<32x128xf32>
    %14 = arith.select %12, %13, %8 : vector<32x128xi1>, vector<32x128xf32>
    %c0_12 = arith.constant 0 : index
    %c0_13 = arith.constant 0 : index
    %15 = vector.load %arg9[%c0_12, %c0_13] : memref<32x1xf32, #tpu.memory_space<vmem>>, vector<32x1xf32>
    %cst_14 = arith.constant dense<0xFF800000> : vector<32xf32>
    %16 = vector.multi_reduction <maximumf>, %14, %cst_14 [1] : vector<32x128xf32> to vector<32xf32>
    %17 = vector.shape_cast %16 : vector<32xf32> to vector<32x1xf32>
    %18 = arith.maximumf %15, %17 : vector<32x1xf32>
    %19 = arith.subf %15, %18 : vector<32x1xf32>
    %20 = math.exp %19 : vector<32x1xf32>
    %21 = vector.broadcast %18 : vector<32x1xf32> to vector<32x128xf32>
    %22 = arith.subf %14, %21 : vector<32x128xf32>
    %23 = math.exp %22 : vector<32x128xf32>
    %c0_15 = arith.constant 0 : index
    %c0_16 = arith.constant 0 : index
    %24 = vector.load %arg10[%c0_15, %c0_16] : memref<32x1xf32, #tpu.memory_space<vmem>>, vector<32x1xf32>
    %25 = arith.mulf %20, %24 : vector<32x1xf32>
    %cst_17 = arith.constant dense<0.000000e+00> : vector<32xf32>
    %26 = vector.multi_reduction <add>, %23, %cst_17 [1] : vector<32x128xf32> to vector<32xf32>
    %27 = vector.shape_cast %26 : vector<32xf32> to vector<32x1xf32>
    %28 = arith.addf %25, %27 : vector<32x1xf32>
    %c0_18 = arith.constant 0 : index
    %c0_19 = arith.constant 0 : index
    %29 = vector.load %arg10[%c0_18, %c0_19] : memref<32x1xf32, #tpu.memory_space<vmem>>, vector<32x1xf32>
    tpu.vector_store %arg10[%c0_18, %c0_19], %28 {strides = array<i32>} : memref<32x1xf32, #tpu.memory_space<vmem>>, vector<32x1xf32>,
    %c0_20 = arith.constant 0 : index
    %c0_21 = arith.constant 0 : index
    %30 = vector.load %arg11[%c0_20, %c0_21] : memref<32x32xf32, #tpu.memory_space<vmem>>, vector<32x32xf32>
    %31 = vector.broadcast %20 : vector<32x1xf32> to vector<32x32xf32>
    %32 = arith.mulf %31, %30 : vector<32x32xf32>
    %cst_22 = arith.constant dense<0.000000e+00> : vector<32x32xf32>
    %33 = tpu.matmul %23, %7, %cst_22 {dimension_numbers = #tpu.dot_dimension_numbers<[1], [0], [0], [1], [0, 0, 1, 1], [], []>} : vector<32x128xf32>, vector<128x32xf32>, vector<32x32xf32> -> vector<32x32xf32>
    %34 = arith.addf %32, %33 : vector<32x32xf32>
    %c0_23 = arith.constant 0 : index
    %c0_24 = arith.constant 0 : index
    %35 = vector.load %arg11[%c0_23, %c0_24] : memref<32x32xf32, #tpu.memory_space<vmem>>, vector<32x32xf32>
    tpu.vector_store %arg11[%c0_23, %c0_24], %34 {strides = array<i32>} : memref<32x32xf32, #tpu.memory_space<vmem>>, vector<32x32xf32>,
    %c0_25 = arith.constant 0 : index
    %c0_26 = arith.constant 0 : index
    %36 = vector.load %arg9[%c0_25, %c0_26] : memref<32x1xf32, #tpu.memory_space<vmem>>, vector<32x1xf32>
    tpu.vector_store %arg9[%c0_25, %c0_26], %18 {strides = array<i32>} : memref<32x1xf32, #tpu.memory_space<vmem>>, vector<32x1xf32>,
    %c0_i32_27 = arith.constant 0 : i32
    %37 = arith.cmpi eq, %arg2, %c0_i32_27 : i32
    %38 = arith.extui %37 : i1 to i32
    %c0_i32_28 = arith.constant 0 : i32
    %39 = arith.cmpi ne, %38, %c0_i32_28 : i32
    scf.if %39 {
      %c0_29 = arith.constant 0 : index
      %c0_30 = arith.constant 0 : index
      %40 = vector.load %arg11[%c0_29, %c0_30] : memref<32x32xf32, #tpu.memory_space<vmem>>, vector<32x32xf32>
      %c0_31 = arith.constant 0 : index
      %c0_32 = arith.constant 0 : index
      %41 = vector.load %arg10[%c0_31, %c0_32] : memref<32x1xf32, #tpu.memory_space<vmem>>, vector<32x1xf32>
      %42 = tpu.reciprocal %41 {approx = true} : vector<32x1xf32> -> vector<32x1xf32>
      %43 = vector.broadcast %42 : vector<32x1xf32> to vector<32x32xf32>
      %44 = arith.mulf %40, %43 : vector<32x32xf32>
      %c0_33 = arith.constant 0 : index
      %c0_34 = arith.constant 0 : index
      %c0_35 = arith.constant 0 : index
      %45 = vector.load %arg7[%c0_33, %c0_34, %c0_35] : memref<1x32x32xf32, #tpu.memory_space<vmem>>, vector<1x32x32xf32>
      %46 = vector.shape_cast %45 : vector<1x32x32xf32> to vector<32x32xf32>
      %47 = vector.shape_cast %44 : vector<32x32xf32> to vector<1x32x32xf32>
      tpu.vector_store %arg7[%c0_33, %c0_34, %c0_35], %47 {strides = array<i32>} : memref<1x32x32xf32, #tpu.memory_space<vmem>>, vector<1x32x32xf32>,
    } else {
    }
    return
  }
  func.func @transform_0(%arg0: i32, %arg1: i32, %arg2: i32) -> (i32, i32, i32) {
    %c0_i32 = arith.constant 0 : i32
    %c0_i32_0 = arith.constant 0 : i32
    return %arg0, %arg1, %c0_i32 : i32, i32, i32
  }
  func.func @transform_1(%arg0: i32, %arg1: i32, %arg2: i32) -> (i32, i32, i32) {
    %c0_i32 = arith.constant 0 : i32
    %c0_i32_0 = arith.constant 0 : i32
    return %arg0, %arg2, %c0_i32 : i32, i32, i32
  }
  func.func @transform_2(%arg0: i32, %arg1: i32, %arg2: i32) -> (i32, i32, i32) {
    %c0_i32 = arith.constant 0 : i32
    %c0_i32_0 = arith.constant 0 : i32
    return %arg0, %arg2, %c0_i32 : i32, i32, i32
  }
  func.func @transform_3(%arg0: i32, %arg1: i32, %arg2: i32) -> (i32, i32, i32) {
    %c0_i32 = arith.constant 0 : i32
    return %arg0, %arg1, %arg2 : i32, i32, i32
  }
  func.func @transform_4(%arg0: i32, %arg1: i32, %arg2: i32) -> (i32, i32, i32) {
    %c0_i32 = arith.constant 0 : i32
    %c0_i32_0 = arith.constant 0 : i32
    return %arg0, %arg1, %c0_i32 : i32, i32, i32
  }
}

</mosaic_0001>

<bundles_post_ra>
// kernel: tpu_custom_call.1
= control target key start
LH: loop header
LB: loop body
LE: loop exit
PB: predicated region body
PF: predicated region fallthrough
CT: control target
= control target key end

     0   :  { %9 = vsyncpa [#allocation7], 0  ;;  %s1633_s0 = inlined_call_operand.vmem [shape: f32[2,32,32], index: 0, kind: input, shape index: {}]   ;;  %s1634_s1 = inlined_call_operand.vmem [shape: f32[2,128,32], index: 1, kind: input, shape index: {}]   ;;  %s1635_s2 = inlined_call_operand.vmem [shape: f32[2,128,32], index: 2, kind: input, shape index: {}]   ;;  %s1636_s3 = inlined_call_operand.vmem [shape: s8[2,32,128], index: 3, kind: input, shape index: {}]   ;;  %s1637_s4 = inlined_call_operand.hbm [shape: f32[2,32,32], index: 4, kind: output, shape index: {}]  }
   0x1   :  { %11 = vsyncpa [#allocation7 + $0x1], 0  ;;  %s1352_s15 = smov 0   ;;  %s1354_s16 = smov 0  }
   0x2   :  { %s1356_s17 = smov 0   ;;  %s1358_s18 = smov 0  }
   0x3   :  { %s1360_s19 = smov 0   ;;  %s1362_s20 = smov 0  }
   0x4 LB: > { %s999_s21 = sadd.s32 4294967295, %s1319_s20   ;;  %s1000_s22 = sadd.s32 4294967294, %s1319_s20   ;;  %s1319_s20 = sphi %s1362_s20, %s17_s20   ;;  %s1315_s19 = sphi %s1360_s19, %s1644_s19   ;;  %s1311_s18 = sphi %s1358_s18, %s1643_s18   ;;  %s1307_s17 = sphi %s1356_s17, %s1642_s17   ;;  %s1303_s16 = sphi %s1354_s16, %s1641_s16   ;;  %s1299_s15 = sphi %s1352_s15, %s1640_s15  }
   0x5   : > { %s36_s23 = sadd.s32 1, %s1315_s19  ;;  %s159_s24 = sadd.s32 1, %s1307_s17 }
   0x6   : > { %p38_p0 = scmp.ge.s32.totalorder %s36_s23, 2  ;;  %p169_p1 = scmp.ne.s32.totalorder %s1307_s17, %s1303_s16 }
   0x7   : > { %p170_p2 = scmp.eq.s32.totalorder %s999_s21, 1  ;;  %p175_p3 = scmp.ne.s32.totalorder %s1303_s16, %s1299_s15 }
   0x8   : > { %s1646_s23 = smov (%p38_p0, %s36_s23), 0  ;;  %p176_p5 = scmp.eq.s32.totalorder %s1000_s22, 1 }
   0x9   : > { %p1392_p4 = por %p170_p2, %p169_p1  ;;  %s154_s26 = ssub.s32 %s1315_s19, %s1646_s23 }
   0xa   : > { %p1003_p6 = scmp.ge.s32.totalorder %s1319_s20, 1  ;;  %p157_p7 = scmp.eq.s32.totalorder %s154_s26, 0 }
   0xb   : > { %p1399_p8 = por %p176_p5, %p175_p3  ;;  %p246_p9 = scmp.lt.s32.totalorder %s1319_s20, 3 }
   0xc   : > { %s1405_s28 = scalar_select %p157_p7, %s1307_s17, %s159_s24  }
   0xd   : > { %p247_p10 = pnand %p1003_p6, %p246_p9 }
   0xe   : > { %p305_p11 = scmp.lt.s32.totalorder (!%p247_p10), %s1311_s18, 1 }
   0xf   : > { %250 = sbr.rel (%p247_p10) target bundleno = 881 (0x371), region = 36 }
  0x14   : > { %s1409_s29 = scalar_select %p305_p11, %s1311_s18, 1  ;;  %vm359_vm0 = vcmask 261120   ;;  %v1321_v28 = vmov 0   ;;  %vm364_vm1 = vcmask 7168   ;;  %v1322_v29 = vmov -2.3819763e+38  }
  0x15   : > { %1217 = vset.pattern.permute.xlu0 %v1321_v28  ;;  %1218 = vset.pattern.permute.xlu1 %v1321_v28  ;;  %365 = vst.msk [vmem:[#allocation3] sm:$0xff] %vm364_vm1, %v1322_v29  ;;  %366 = vst.msk [vmem:[#allocation3 + $0x8] sm:$0xff] %vm364_vm1, %v1322_v29  ;;  %v1323_v60 = vmov 0.0  }
  0x16   : > { %s1038_s30 = sshll.u32 %s1409_s29, 7  ;;  %s1037_s8 = sshll.u32 %s1409_s29, 5  ;;  %367 = vst.msk [vmem:[#allocation3 + $0x10] sm:$0xff] %vm364_vm1, %v1322_v29  ;;  %368 = vst.msk [vmem:[#allocation3 + $0x18] sm:$0xff] %vm364_vm1, %v1322_v29 }
  0x17   : > { %s1417_s7 = scalar_lea.vmem %s1634_s1, %s1038_s30  ;;  %s312_s11 = scalar_lea.vmem %s1633_s0, %s1037_s8  ;;  %369 = vst.msk [vmem:[#allocation4] sm:$0xff] %vm364_vm1, %v1323_v60  ;;  %370 = vst.msk [vmem:[#allocation4 + $0x8] sm:$0xff] %vm364_vm1, %v1323_v60 }
  0x18   : > { %v396_v0 = vld [vmem:[%s1417_s7 + $0x78] sm:$0xff]  ;;  %v395_v1 = vld [vmem:[%s1417_s7 + $0x70] sm:$0xff]  ;;  %v394_v2 = vld [vmem:[%s1417_s7 + $0x68] sm:$0xff]  ;;  %s1011_s12 = sshll.u32 %s1409_s29, 3  ;;  %371 = vst.msk [vmem:[#allocation4 + $0x10] sm:$0xff] %vm364_vm1, %v1323_v60  ;;  %s1512_s26 = scalar_lea.vmem %s1635_s2, %s1038_s30 }
  0x19   : > { %1081 = vmatprep.subr.msk.mxu0 %vm359_vm0, %v396_v0  ;;  %v351_v3 = vld [vmem:[%s312_s11] sm:$0xff]  ;;  %v352_v4 = vld [vmem:[%s312_s11 + $0x8] sm:$0xff]  ;;  %v353_v7 = vld [vmem:[%s312_s11 + $0x10] sm:$0xff]  ;;  %s343_s21 = scalar_lea.vmem %s1636_s3, %s1011_s12  ;;  %372 = vst.msk [vmem:[#allocation4 + $0x18] sm:$0xff] %vm364_vm1, %v1323_v60  ;;  %s301_s29 = sand.u32 1, %s1303_s16  }
  0x1a   : > { %1082 = vmatpush3.xpose.msk.msra.mxu0 %vm359_vm0, %v396_v0  ;;  %v355_v5 = vmul.f32 0.17677669, %v351_v3  ;;  %v356_v6 = vmul.f32 0.17677669, %v352_v4  ;;  %v354_v8 = vld [vmem:[%s312_s11 + $0x18] sm:$0xff]  ;;  %v393_v11 = vld [vmem:[%s1417_s7 + $0x60] sm:$0xff] }
  0x1b   : > { %1083 = vmatprep.subr.msk.mxu0 %vm359_vm0, %v395_v1  ;;  %v357_v9 = vmul.f32 0.17677669, %v353_v7  ;;  %v358_v10 = vmul.f32 0.17677669, %v354_v8  ;;  %v392_v12 = vld [vmem:[%s1417_s7 + $0x58] sm:$0xff]  ;;  %v391_v14 = vld [vmem:[%s1417_s7 + $0x50] sm:$0xff] }
  0x1c   : > { %360 = vst.msk [vmem:[#allocation2] sm:$0xff] %vm359_vm0, %v355_v5  ;;  %361 = vst.msk [vmem:[#allocation2 + $0x8] sm:$0xff] %vm359_vm0, %v356_v6  ;;  %v390_v15 = vld [vmem:[%s1417_s7 + $0x48] sm:$0xff]  ;;  %v389_v16 = vld [vmem:[%s1417_s7 + $0x40] sm:$0xff]  ;;  %s1004_s30 = sshll.u32 %s301_s29, 5  ;;  %s1588_s11 = scalar_lea.sflag [#allocation7], %s301_s29 }
  0x1d   : > { %362 = vst.msk [vmem:[#allocation2 + $0x10] sm:$0xff] %vm359_vm0, %v357_v9  ;;  %363 = vst.msk [vmem:[#allocation2 + $0x18] sm:$0xff] %vm359_vm0, %v358_v10  ;;  %v388_v17 = vld [vmem:[%s1417_s7 + $0x38] sm:$0xff]  ;;  %v387_v18 = vld [vmem:[%s1417_s7 + $0x30] sm:$0xff]  ;;  %s303_s5 = scalar_lea.vmem [#allocation6], %s1004_s30  ;;  %s1324_s12 = smov [#allocation6]  }
  0x1e   : > { %1084 = vmatpush3.xpose.msk.msra.mxu0 %vm359_vm0, %v395_v1  ;;  %v386_v19 = vld [vmem:[%s1417_s7 + $0x28] sm:$0xff]  ;;  %v385_v20 = vld [vmem:[%s1417_s7 + $0x20] sm:$0xff]  ;;  %v384_v21 = vld [vmem:[%s1417_s7 + $0x18] sm:$0xff]  ;;  %373 = vst.msk [vmem:[#allocation5] sm:$0xff] %vm359_vm0, %v1323_v60  ;;  %s863_s6 = sshll.u32 %s303_s5, 4  ;;  %s1247_s13 = sshll.u32 %s1324_s12, 4  ;;  %s1580_s6 = int_to_ptr.vmem [resolvable:$true] %s863_s6  ;;  %s1248_s13 = int_to_ptr.vmem [resolvable:$false] %s1247_s13 }
  0x1f   : > { %1085 = vmatprep.subr.msk.mxu0 %vm359_vm0, %v394_v2  ;;  %v383_v22 = vld [vmem:[%s1417_s7 + $0x10] sm:$0xff]  ;;  %v382_v23 = vld [vmem:[%s1417_s7 + $0x8] sm:$0xff]  ;;  %v381_v24 = vld [vmem:[%s1417_s7] sm:$0xff]  ;;  %374 = vst.msk [vmem:[#allocation5 + $0x8] sm:$0xff] %vm359_vm0, %v1323_v60  ;;  %s1040_s7 = sshll.u32 %s1311_s18, 9  ;;  %s1243_s18 = scalar_lea.vmem %s1580_s6, 512 }
  0x20   : > { %v559_v30 = vld [vmem:[%s343_s21] sm:$0xff]  ;;  %375 = vst.msk [vmem:[#allocation5 + $0x10] sm:$0xff] %vm359_vm0, %v1323_v60  ;;  %376 = vst.msk [vmem:[#allocation5 + $0x18] sm:$0xff] %vm359_vm0, %v1323_v60  ;;  %v412_v61 = vld [vmem:[%s1512_s26 + $0x78] sm:$0xff]  ;;  %s1585_s10 = scalar_lea.hbm %s1637_s4, %s1040_s7  ;;  %p1244_p12 = scmp.ne.s32.totalorder %s1580_s6, %s1243_s18 }
  0x21   : > { %vm560_vm2 = vnez %v559_v30  ;;  %v411_v62 = vld [vmem:[%s1512_s26 + $0x70] sm:$0xff]  ;;  %1119 = vmatprep.subr.mxu1 %v412_v61  ;;  %v410_v63 = vld [vmem:[%s1512_s26 + $0x68] sm:$0xff]  ;;  %v409_v0 = vld [vmem:[%s1512_s26 + $0x60] sm:$0xff]  ;;  %s1249_s14 = scalar_lea.vmem %s1248_s13, 1024  ;;  %p1250_p1 = scmp.lt.s32.totalorder %s1580_s6, %s1248_s13 }
  0x22   : > { %1086 = vmatpush3.xpose.msk.msra.mxu0 %vm359_vm0, %v394_v2  ;;  %v561_v31 = vsel %vm560_vm2, 16843009, %v1321_v28  ;;  %1120 = vmatpush3.msra.mxu1 %v412_v61  ;;  %v408_v1 = vld [vmem:[%s1512_s26 + $0x58] sm:$0xff]  ;;  %v1519_v2 = vld [vmem:[#allocation3] sm:$0xff]  ;;  %v407_v3 = vld [vmem:[%s1512_s26 + $0x50] sm:$0xff]  ;;  %p1245_p13 = pnand %p1244_p12, %p1392_p4  ;;  %p1251_p2 = scmp.lt.s32.totalorder %s1249_s14, %s1243_s18 }
  0x23   : > { %1087 = vmatprep.subr.msk.mxu0 %vm359_vm0, %v393_v11  ;;  %v377_v13 = vld [vmem:[#allocation2] sm:$0xff]  ;;  %v378_v25 = vld [vmem:[#allocation2 + $0x8] sm:$0xff]  ;;  %v562_v32 = vunpack.c.0.s8 %v561_v31  ;;  %v563_v34 = vunpack.c.1.s8 %v561_v31  ;;  %v564_v35 = vunpack.c.2.s8 %v561_v31  ;;  %v565_v39 = vunpack.c.3.s8 %v561_v31  ;;  %1121 = vmatprep.subr.mxu1 %v411_v62  ;;  %v1528_v8 = vld [vmem:[#allocation3 + $0x10] sm:$0xff] }
  0x24   : > { %1113 = vmatprep.mubr.msk.f32.mxu0 %vm359_vm0, %v377_v13  ;;  %v379_v26 = vld [vmem:[#allocation2 + $0x10] sm:$0xff]  ;;  %v380_v27 = vld [vmem:[#allocation2 + $0x18] sm:$0xff]  ;;  %1122 = vmatpush3.msra.mxu1 %v411_v62  ;;  %v406_v5 = vld [vmem:[%s1512_s26 + $0x48] sm:$0xff]  ;;  %p1246_p0 = pneg %p1245_p13  ;;  %p1252_p3 = por %p1251_p2, %p1250_p1 }
  0x25   : > { %v566_v33 = vpack.c.b16 %v562_v32, %v562_v32  ;;  %v568_v37 = vpack.c.b16 %v563_v34, %v563_v34  ;;  %v570_v38 = vpack.c.b16 %v564_v35, %v564_v35  ;;  %v572_v42 = vpack.c.b16 %v565_v39, %v565_v39  ;;  %1123 = vmatprep.subr.mxu1 %v410_v63  ;;  %v1526_v7 = vld [vmem:[#allocation3 + $0x8] sm:$0xff]  ;;  %v405_v9 = vld [vmem:[%s1512_s26 + $0x40] sm:$0xff]  ;;  %v404_v13 = vld [vmem:[%s1512_s26 + $0x38] sm:$0xff] }
  0x26   : > { %1088 = vmatpush3.xpose.msk.msra.mxu0 %vm359_vm0, %v393_v11  ;;  %1124 = vmatpush3.msra.mxu1 %v410_v63  ;;  %v656_v60 = vld [vmem:[#allocation4 + $0x10] sm:$0xff]  ;;  %p1253_p5 = pnand %p1252_p3, %p1246_p0 }
  0x27   : > { %1089 = vmatprep.subr.msk.mxu0 %vm359_vm0, %v392_v12  ;;  %v567_v36 = vpack.c.b8 %v566_v33, %v566_v33  ;;  %v569_v40 = vpack.c.b8 %v568_v37, %v568_v37  ;;  %v571_v41 = vpack.c.b8 %v570_v38, %v570_v38  ;;  %v573_v44 = vpack.c.b8 %v572_v42, %v572_v42 }
  0x28   : > { %1125 = vmatprep.subr.mxu1 %v409_v0 }
  0x29   : > { %vm574_vm3 = vnez %v567_v36  ;;  %vm575_vm4 = vnez %v569_v40  ;;  %vm576_vm5 = vnez %v571_v41  ;;  %vm577_vm6 = vnez %v573_v44  ;;  %1126 = vmatpush3.msra.mxu1 %v409_v0  ;;  %v657_v0 = vld [vmem:[#allocation4 + $0x18] sm:$0xff] }
  0x2a   : > { %1090 = vmatpush3.xpose.msk.msra.mxu0 %vm359_vm0, %v392_v12  ;;  %v578_v43 = vsel %vm574_vm3, 16843009, %v1321_v28  ;;  %v579_v46 = vsel %vm575_vm4, 16843009, %v1321_v28  ;;  %v580_v47 = vsel %vm576_vm5, 16843009, %v1321_v28  ;;  %1127 = vmatprep.subr.mxu1 %v408_v1 }
  0x2b   : > { %1091 = vmatprep.subr.msk.mxu0 %vm359_vm0, %v391_v14  ;;  %v582_v45 = vunpack.c.0.s8 %v578_v43  ;;  %v583_v49 = vunpack.c.0.s8 %v579_v46  ;;  %v584_v50 = vunpack.c.0.s8 %v580_v47  ;;  %v581_v51 = vsel %vm577_vm6, 16843009, %v1321_v28  ;;  %1128 = vmatpush3.msra.mxu1 %v408_v1  ;;  %v397_v28 = vld [vmem:[%s1512_s26] sm:$0xff] }
  0x2c   : > { %v585_v55 = vunpack.c.0.s8 %v581_v51  ;;  %1129 = vmatprep.subr.mxu1 %v407_v3 }
  0x2d   : > { %vm586_vm7 = vcmp.ne.s32.totalorder %v582_v45, 0  ;;  %vm587_vm8 = vcmp.ne.s32.totalorder %v583_v49, 0  ;;  %vm588_vm9 = vcmp.ne.s32.totalorder %v584_v50, 0  ;;  %1130 = vmatpush3.msra.mxu1 %v407_v3 }
  0x2e   : > { %1092 = vmatpush3.xpose.msk.msra.mxu0 %vm359_vm0, %v391_v14  ;;  %vm589_vm10 = vcmp.ne.s32.totalorder %v585_v55, 0  ;;  %1131 = vmatprep.subr.mxu1 %v406_v5 }
  0x2f   : > { %1093 = vmatprep.subr.msk.mxu0 %vm359_vm0, %v390_v15  ;;  %1132 = vmatpush3.msra.mxu1 %v406_v5 }
  0x30   : > { %1133 = vmatprep.subr.mxu1 %v405_v9 }
  0x31   : > { %1134 = vmatpush3.msra.mxu1 %v405_v9 }
  0x32   : > { %1094 = vmatpush3.xpose.msk.msra.mxu0 %vm359_vm0, %v390_v15  ;;  %1135 = vmatprep.subr.mxu1 %v404_v13 }
  0x33   : > { %1095 = vmatprep.subr.msk.mxu0 %vm359_vm0, %v389_v16  ;;  %1136 = vmatpush3.msra.mxu1 %v404_v13 }
  0x36   : > { %1096 = vmatpush3.xpose.msk.msra.mxu0 %vm359_vm0, %v389_v16  ;;  %v1541_v16 = vld [vmem:[#allocation3 + $0x18] sm:$0xff] }
  0x37   : > { %1097 = vmatprep.subr.msk.mxu0 %vm359_vm0, %v388_v17 }
  0x3a   : > { %1098 = vmatpush3.xpose.msk.msra.mxu0 %vm359_vm0, %v388_v17  ;;  %v403_v17 = vld [vmem:[%s1512_s26 + $0x30] sm:$0xff] }
  0x3b   : > { %1099 = vmatprep.subr.msk.mxu0 %vm359_vm0, %v387_v18  ;;  %1137 = vmatprep.subr.mxu1 %v403_v17 }
  0x3c   : > { %1138 = vmatpush3.msra.mxu1 %v403_v17 }
  0x3e   : > { %1100 = vmatpush3.xpose.msk.msra.mxu0 %vm359_vm0, %v387_v18 }
  0x3f   : > { %1101 = vmatprep.subr.msk.mxu0 %vm359_vm0, %v386_v19 }
  0x42   : > { %1102 = vmatpush3.xpose.msk.msra.mxu0 %vm359_vm0, %v386_v19 }
  0x43   : > { %1103 = vmatprep.subr.msk.mxu0 %vm359_vm0, %v385_v20 }
  0x46   : > { %1104 = vmatpush3.xpose.msk.msra.mxu0 %vm359_vm0, %v385_v20 }
  0x47   : > { %1105 = vmatprep.subr.msk.mxu0 %vm359_vm0, %v384_v21 }
  0x4a   : > { %1106 = vmatpush3.xpose.msk.msra.mxu0 %vm359_vm0, %v384_v21  ;;  %v402_v21 = vld [vmem:[%s1512_s26 + $0x28] sm:$0xff] }
  0x4b   : > { %1107 = vmatprep.subr.msk.mxu0 %vm359_vm0, %v383_v22  ;;  %1139 = vmatprep.subr.mxu1 %v402_v21 }
  0x4c   : > { %1140 = vmatpush3.msra.mxu1 %v402_v21 }
  0x4e   : > { %1108 = vmatpush3.xpose.msk.msra.mxu0 %vm359_vm0, %v383_v22 }
  0x4f   : > { %1109 = vmatprep.subr.msk.mxu0 %vm359_vm0, %v382_v23 }
  0x52   : > { %1110 = vmatpush3.xpose.msk.msra.mxu0 %vm359_vm0, %v382_v23  ;;  %v401_v23 = vld [vmem:[%s1512_s26 + $0x20] sm:$0xff] }
  0x53   : > { %1111 = vmatprep.subr.msk.mxu0 %vm359_vm0, %v381_v24  ;;  %1141 = vmatprep.subr.mxu1 %v401_v23 }
  0x54   : > { %1142 = vmatpush3.msra.mxu1 %v401_v23 }
  0x56   : > { %1112 = vmatpush3.xpose.msk.msra.mxu0 %vm359_vm0, %v381_v24 }
  0x59   : > { %1114 = vmatmul.mubr.msk.f32.vlgmr.msra.gmra.mxu0 %vm359_vm0, %v378_v25  ;;  %v400_v25 = vld [vmem:[%s1512_s26 + $0x18] sm:$0xff] }
  0x5a   : > { %1116 = vmatprep.mubr.msk.f32.mxu0 %vm359_vm0, %v379_v26  ;;  %1143 = vmatprep.subr.mxu1 %v400_v25  ;;  %v399_v26 = vld [vmem:[%s1512_s26 + $0x10] sm:$0xff] }
  0x5b   : > { %1144 = vmatpush3.msra.mxu1 %v400_v25 }
  0x5c   : > { %1145 = vmatprep.subr.mxu1 %v399_v26 }
  0x5d   : > { %1117 = vmatmul.mubr.msk.f32.gmra.mxu0 %vm359_vm0, %v380_v27  ;;  %v398_v27 = vld [vmem:[%s1512_s26 + $0x8] sm:$0xff]  ;;  %1146 = vmatpush3.msra.mxu1 %v399_v26  ;;  %v681_v26 = vld [vmem:[#allocation5 + $0x10] sm:$0xff] }
  0x5e   : > { %1147 = vmatprep.subr.mxu1 %v398_v27 }
  0x5f   : > { %1148 = vmatpush3.msra.mxu1 %v398_v27 }
  0x60   : > { %1149 = vmatprep.subr.mxu1 %v397_v28 }
  0x61   : > { %1150 = vmatpush3.msra.mxu1 %v397_v28 }
 0x119   : > { %v1115_v48 = vpop.f32.mrf.mxu0 }
 0x11a   : > { %v1490_v57 = vsel %vm587_vm8, -2.3819763e+38, %v1115_v48 }
 0x11b   : > { %v540_v52 = vpop.f32.mrf.mxu0 }
 0x11c   : > { %v1487_v53 = vsel %vm586_vm7, -2.3819763e+38, %v540_v52 }
 0x11d   : > { %598 = vmax.xlane.f32.xlu0 %v1487_v53  ;;  %v1118_v54 = vpop.f32.mrf.mxu0 }
 0x11e   : > { %v1496_v59 = vsel %vm589_vm10, -2.3819763e+38, %v1118_v54 }
 0x11f   : > { %v550_v56 = vpop.f32.mrf.mxu0 }
 0x120   : > { %v1492_v58 = vsel %vm588_vm9, -2.3819763e+38, %v550_v56  ;;  %v655_v56 = vld [vmem:[#allocation4 + $0x8] sm:$0xff] }
 0x121   : > { %600 = vmax.xlane.f32.xlu0 %v1490_v57  ;;  %602 = vmax.xlane.f32.xlu1 %v1492_v58 }
 0x125   : > { %604 = vmax.xlane.f32.xlu1 %v1496_v59 }
 0x1a6   : > { %v599_v4 = vpop.xlane.xlu0 %598 }
 0x1a7   : > { %v1524_v6 = vmax.f32 %v1519_v2, %v599_v4 }
 0x1a9   : > { %v610_v10 = vsub.f32 %v1519_v2, %v1524_v6  ;;  %800 = vst.msk [vmem:[#allocation3] sm:$0xff] %vm364_vm1, %v1524_v6  ;;  %624 = vperm.xlu0 %1217, %v1524_v6  }
 0x1aa   : > { %v601_v11 = vpop.xlane.xlu0 %600  ;;  %v603_v12 = vpop.xlane.xlu1 %602 }
 0x1ab   : > { %v607_v14 = vmax.f32 %v1526_v7, %v601_v11  ;;  %v1539_v15 = vmax.f32 %v1528_v8, %v603_v12  ;;  %v614_v46 = vmul.f32 1.442695, %v610_v10 }
 0x1ad   : > { %v611_v18 = vsub.f32 %v1526_v7, %v607_v14  ;;  %801 = vst.msk [vmem:[#allocation3 + $0x8] sm:$0xff] %vm364_vm1, %v607_v14  ;;  %v612_v19 = vsub.f32 %v1528_v8, %v1539_v15  ;;  %802 = vst.msk [vmem:[#allocation3 + $0x10] sm:$0xff] %vm364_vm1, %v1539_v15  ;;  %629 = vperm.xlu1 %1218, %v607_v14   ;;  %v680_v14 = vld [vmem:[#allocation5 + $0x8] sm:$0xff] }
 0x1ae   : > { %v605_v20 = vpop.xlane.xlu1 %604 }
 0x1af   : > { %v609_v22 = vmax.f32 %v1541_v16, %v605_v20  ;;  %v616_v44 = vmul.f32 1.442695, %v611_v18  ;;  %v618_v47 = vmul.f32 1.442695, %v612_v19 }
 0x1b1   : > { %v613_v24 = vsub.f32 %v1541_v16, %v609_v22  ;;  %803 = vst.msk [vmem:[#allocation3 + $0x18] sm:$0xff] %vm364_vm1, %v609_v22  ;;  %634 = vperm.xlu1 %1218, %v1539_v15   ;;  %v679_v16 = vld [vmem:[#allocation5] sm:$0xff] }
 0x1b3   : > { %v620_v48 = vmul.f32 1.442695, %v613_v24  ;;  %v682_v24 = vld [vmem:[#allocation5 + $0x18] sm:$0xff] }
 0x1b5   : > { %639 = vperm.xlu1 %1218, %v609_v22  }
 0x224   : > { %v625_v29 = vpop.permute.xlu0 %624 }
 0x225   : > { %v642_v30 = vsub.f32 %v1487_v53, %v625_v29  ;;  %v654_v53 = vld [vmem:[#allocation4] sm:$0xff] }
 0x227   : > { %v646_v31 = vmul.f32 1.442695, %v642_v30 }
 0x228   : > { %v630_v32 = vpop.permute.xlu1 %629 }
 0x229   : > { %1219 = vpow2.f32 %v646_v31  ;;  %v643_v33 = vsub.f32 %v1490_v57, %v630_v32 }
 0x22b   : > { %v648_v34 = vmul.f32 1.442695, %v643_v33 }
 0x22c   : > { %v635_v35 = vpop.permute.xlu1 %634 }
 0x22d   : > { %1221 = vpow2.f32 %v648_v34  ;;  %v644_v36 = vsub.f32 %v1492_v58, %v635_v35 }
 0x22f   : > { %v650_v37 = vmul.f32 1.442695, %v644_v36 }
 0x230   : > { %v640_v38 = vpop.permute.xlu1 %639 }
 0x231   : > { %1223 = vpow2.f32 %v650_v37  ;;  %v645_v39 = vsub.f32 %v1496_v59, %v640_v38 }
 0x233   : > { %v652_v40 = vmul.f32 1.442695, %v645_v39 }
 0x235   : > { %1225 = vpow2.f32 %v652_v40 }
 0x236   : > { %v1220_v41 = vpop.eup %1219  ;;  %1227 = vpow2.f32 %v616_v44 }
 0x237   : > { %1151 = vmatprep.mubr.f32.mxu1 %v1220_v41  ;;  %662 = vadd.xlane.f32.xlu1 %v1220_v41  ;;  %1229 = vpow2.f32 %v614_v46 }
 0x238   : > { %1231 = vpow2.f32 %v618_v47 }
 0x239   : > { %1233 = vpow2.f32 %v620_v48 }
 0x23a   : > { %v1222_v42 = vpop.eup %1221 }
 0x23b   : > { %664 = vadd.xlane.f32.xlu0 %v1222_v42  ;;  %1152 = vmatmul.mubr.f32.vlgmr.msra.gmra.mxu1 %v1222_v42 }
 0x23e   : > { %v1224_v43 = vpop.eup %1223 }
 0x23f   : > { %666 = vadd.xlane.f32.xlu1 %v1224_v43  ;;  %1154 = vmatprep.mubr.f32.mxu1 %v1224_v43 }
 0x242   : > { %v1226_v45 = vpop.eup %1225 }
 0x243   : > { %668 = vadd.xlane.f32.xlu1 %v1226_v45  ;;  %1155 = vmatmul.mubr.f32.gmra.mxu1 %v1226_v45  ;;  %v1228_v49 = vpop.eup %1227 }
 0x244   : > { %v1230_v50 = vpop.eup %1229  ;;  %v659_v58 = vmul.f32 %v1228_v49, %v655_v56 }
 0x245   : > { %v1232_v51 = vpop.eup %1231  ;;  %v658_v54 = vmul.f32 %v1230_v50, %v654_v53 }
 0x246   : > { %v1234_v52 = vpop.eup %1233  ;;  %v660_v62 = vmul.f32 %v1232_v51, %v656_v60 }
 0x247   : > { %v661_v3 = vmul.f32 %v1234_v52, %v657_v0 }
 0x251   : > { %690 = vperm.xlu0 %1217, %v1228_v49  }
 0x254   : > { %685 = vperm.xlu1 %1218, %v1230_v50  }
 0x258   : > { %695 = vperm.xlu1 %1218, %v1232_v51  }
 0x25c   : > { %700 = vperm.xlu1 %1218, %v1234_v52  }
 0x2c0   : > { %v663_v55 = vpop.xlane.xlu1 %662 }
 0x2c1   : > { %v670_v57 = vadd.f32 %v663_v55, %v658_v54 }
 0x2c3   : > { %675 = vst.msk [vmem:[#allocation4] sm:$0xff] %vm364_vm1, %v670_v57 }
 0x2c4   : > { %v665_v59 = vpop.xlane.xlu0 %664 }
 0x2c5   : > { %v671_v61 = vadd.f32 %v665_v59, %v659_v58 }
 0x2c7   : > { %676 = vst.msk [vmem:[#allocation4 + $0x8] sm:$0xff] %vm364_vm1, %v671_v61 }
 0x2c8   : > { %v667_v63 = vpop.xlane.xlu1 %666 }
 0x2c9   : > { %v672_v1 = vadd.f32 %v667_v63, %v660_v62 }
 0x2ca   : > { %v811_v2 = vld [vmem:[#allocation4] sm:$0xff] }
 0x2cb   : > { %677 = vst.msk [vmem:[#allocation4 + $0x10] sm:$0xff] %vm364_vm1, %v672_v1  ;;  %1235 = vrcp.f32 %v811_v2 }
 0x2cc   : > { %v669_v4 = vpop.xlane.xlu1 %668  ;;  %v691_v15 = vpop.permute.xlu0 %690 }
 0x2cd   : > { %v673_v5 = vadd.f32 %v669_v4, %v661_v3  ;;  %v704_v18 = vmul.f32 %v691_v15, %v680_v14 }
 0x2ce   : > { %v812_v6 = vld [vmem:[#allocation4 + $0x8] sm:$0xff] }
 0x2cf   : > { %678 = vst.msk [vmem:[#allocation4 + $0x18] sm:$0xff] %vm364_vm1, %v673_v5  ;;  %1237 = vrcp.f32 %v812_v6 }
 0x2d0   : > { %v686_v13 = vpop.permute.xlu1 %685 }
 0x2d1   : > { %v703_v20 = vmul.f32 %v686_v13, %v679_v16 }
 0x2d2   : > { %v813_v7 = vld [vmem:[#allocation4 + $0x10] sm:$0xff] }
 0x2d3   : > { %1239 = vrcp.f32 %v813_v7 }
 0x2d4   : > { %v696_v17 = vpop.permute.xlu1 %695 }
 0x2d5   : > { %v705_v29 = vmul.f32 %v696_v17, %v681_v26 }
 0x2d6   : > { %v814_v8 = vld [vmem:[#allocation4 + $0x18] sm:$0xff] }
 0x2d7   : > { %1241 = vrcp.f32 %v814_v8 }
 0x2d8   : > { %v1236_v9 = vpop.eup %1235  ;;  %v701_v25 = vpop.permute.xlu1 %700 }
 0x2d9   : > { %821 = vperm.xlu1 %1218, %v1236_v9   ;;  %v706_v27 = vmul.f32 %v701_v25, %v682_v24 }
 0x2dc   : > { %v1238_v10 = vpop.eup %1237 }
 0x2dd   : > { %826 = vperm.xlu0 %1217, %v1238_v10  }
 0x2e0   : > { %v1240_v11 = vpop.eup %1239 }
 0x2e1   : > { %831 = vperm.xlu1 %1218, %v1240_v11  }
 0x2e4   : > { %v1242_v12 = vpop.eup %1241 }
 0x2e5   : > { %836 = vperm.xlu0 %1217, %v1242_v12  }
 0x2fb   : > { %v1153_v19 = vpop.f32.mrf.mxu1 }
 0x2fc   : > { %v793_v21 = vadd.f32 %v1153_v19, %v704_v18 }
 0x2fd   : > { %v773_v22 = vpop.f32.mrf.mxu1 }
 0x2fe   : > { %797 = vst.msk [vmem:[#allocation5 + $0x8] sm:$0xff] %vm359_vm0, %v793_v21  ;;  %v792_v23 = vadd.f32 %v773_v22, %v703_v20 }
 0x300   : > { %796 = vst.msk [vmem:[#allocation5] sm:$0xff] %vm359_vm0, %v792_v23 }
 0x303   : > { %v1156_v28 = vpop.f32.mrf.mxu1 }
 0x304   : > { %v795_v30 = vadd.f32 %v1156_v28, %v706_v27 }
 0x305   : > { %v783_v31 = vpop.f32.mrf.mxu1  ;;  %v808_v37 = vld [vmem:[#allocation5 + $0x8] sm:$0xff] }
 0x306   : > { %799 = vst.msk [vmem:[#allocation5 + $0x18] sm:$0xff] %vm359_vm0, %v795_v30  ;;  %v794_v32 = vadd.f32 %v783_v31, %v705_v29 }
 0x307   : > { %v807_v33 = vld [vmem:[#allocation5] sm:$0xff] }
 0x308   : > { %798 = vst.msk [vmem:[#allocation5 + $0x10] sm:$0xff] %vm359_vm0, %v794_v32 }
 0x30d   : > { %v810_v43 = vld [vmem:[#allocation5 + $0x18] sm:$0xff] }
 0x30f   : > { %v809_v39 = vld [vmem:[#allocation5 + $0x10] sm:$0xff] }
 0x354   : > { %v822_v34 = vpop.permute.xlu1 %821 }
 0x355   : > { %v839_v35 = vmul.f32 %v822_v34, %v807_v33 }
 0x357   : > { %843 = vst.msk [vmem:[%s303_s5] sm:$0xff] %vm359_vm0, %v839_v35 }
 0x358   : > { %v827_v36 = vpop.permute.xlu0 %826 }
 0x359   : > { %v840_v38 = vmul.f32 %v827_v36, %v808_v37 }
 0x35b   : > { %844 = vst.msk [vmem:[%s303_s5 + $0x8] sm:$0xff] %vm359_vm0, %v840_v38 }
 0x35c   : > { %v832_v40 = vpop.permute.xlu1 %831 }
 0x35d   : > { %v841_v41 = vmul.f32 %v832_v40, %v809_v39 }
 0x35f   : > { %845 = vst.msk [vmem:[%s303_s5 + $0x10] sm:$0xff] %vm359_vm0, %v841_v41 }
 0x360   : > { %v837_v42 = vpop.permute.xlu0 %836 }
 0x361   : > { %v842_v44 = vmul.f32 %v837_v42, %v810_v43 }
 0x363   : > { %846 = vst.msk [vmem:[%s303_s5 + $0x18] sm:$0xff] %vm359_vm0, %v842_v44 }
 0x364   : > { %1256 = shalt.err (!%p1253_p5)
}
 0x365   : > { %s1257_s21 = scalar_lea.hbm %s1585_s10, 512  ;;  %s1261_s26 = scalar_lea.hbm %s1637_s4, 1024 }
 0x366   : > { %p1258_p6 = scmp.ne.s32.totalorder %s1585_s10, %s1257_s21  ;;  %p1262_p10 = scmp.lt.s32.totalorder %s1585_s10, %s1637_s4 }
 0x367   : > { %p1263_p11 = scmp.lt.s32.totalorder %s1261_s26, %s1257_s21 }
 0x368   : > { %p1259_p7 = pnand %p1258_p6, %p1392_p4 }
 0x369   : > { %p1264_p12 = por %p1263_p11, %p1262_p10 }
 0x36a   : > { %p1260_p9 = pneg %p1259_p7 }
 0x36c   : > { %p1265_p13 = pnand %p1264_p12, %p1260_p9 }
 0x36e   : > { %1268 = shalt.err (!%p1265_p13)
}
 0x36f   : > { %s1325_s5 = smov 128   ;;  %s1326_s7 = smov 8  }
 0x370   : > { %1157 = dma.vmem_to_hbm [thread:$0]  (%p1392_p4), %s1580_s6, 512, %s1585_s10, %s1588_s11, %s1325_s5, %s1325_s5, %s1326_s7  }
 0x371 PF: > { %p1163_p0 = scmp.ge.s32.totalorder %s1319_s20, 2  ;;  %s878_s8 = sand.u32 1, %s1299_s15  }
 0x372   : > { %s879_s9 = scalar_lea.sflag [#allocation7], %s878_s8 }
 0x373   : > { %p1160_p1 = pnand %p1163_p0, %p1399_p8 }
 0x375   : > { %p1161_p2 = pneg %p1160_p1 }
 0x377   : > { %1294 = dma.done.wait (%p1161_p2), %s879_s9, 512  }
 0x378   : > { %1296 = vsyncadd (%p1161_p2), %s879_s9, 4294966784  ;;  %s17_s20 = sadd.s32 1, %s1319_s20   ;;  %s1640_s15 = smov %s1303_s16 }
 0x379   : > { %p14_p3 = scmp.ge.s32.totalorder %s17_s20, 4   ;;  %s1641_s16 = smov %s1307_s17 }
 0x37a   : > { %s1642_s17 = smov %s1405_s28  ;;  %s1643_s18 = smov %s1315_s19 }
 0x37b   : > { %s1644_s19 = smov %s1646_s23  ;;  %16 = sbr.rel (!%p14_p3) target bundleno = 4 (0x4), region = 88 }
 0x380   :  { %884 = vsyncpa [#allocation7], 1 }
 0x381   :  { %886 = vsyncpa [#allocation7 + $0x1], 1 }

</bundles_post_ra>
